<compile_context>
chip_gen: v7x
topology: tpu7x:2x2x1
jax: 0.10.0
libtpu: 0.0.40
codegen_flags: <defaults>
</compile_context>

<pallas_src>
import functools

import jax
import jax.numpy as jnp
from jax.experimental import pallas as pl
from jax.experimental.pallas import tpu as pltpu


# ----------------------------------------------------------------------------- utils
def _round_up(x, m):
    return (x + m - 1) // m * m


@functools.lru_cache(maxsize=None)
def _tpu_config():
    """(vmem_limit_bytes, tm_max, resident_weight_budget_bytes) for the local TPU generation."""
    kind = ""
    try:
        kind = jax.devices()[0].device_kind.lower()
    except Exception:
        pass
    vmem_cap = None
    try:
        vmem_cap = int(pltpu.get_tpu_info().vmem_capacity_bytes)
    except Exception:
        pass
    if vmem_cap is None:
        if "v7" in kind:
            vmem_cap = 64 << 20          # v7x: 64 MiB per TensorCore
        elif ("v4" in kind) or ("v5" in kind) or ("v6" in kind):
            vmem_cap = 128 << 20
        else:
            vmem_cap = 64 << 20          # conservative default
    vmem_limit = int(min(vmem_cap // 2, 64 << 20))
    tm_max = 128 if "v5" in kind else 256          # 2x256x256 MXUs on v6e/v7x prefer 256-row LHS
    weight_budget = vmem_limit // 3                # room for resident weight x2 pipeline buffers
    return vmem_limit, tm_max, weight_budget


def _plan_kn(K, N):
    """Pick (Kp, Np, tk, tn). Weight-resident (tk=Kp, tn=Np) whenever it fits the VMEM budget."""
    _, _, weight_budget = _tpu_config()
    Kp, Np = _round_up(K, 128), _round_up(N, 128)
    if 2 * (Kp * Np * 2) <= weight_budget:         # bf16 weight, x2 pipeline buffers
        return Kp, Np, Kp, Np
    tk = next(t for t in (512, 256, 128) if Kp % t == 0)
    tn = next(t for t in (512, 256, 128) if Np % t == 0)
    return Kp, Np, tk, tn


def _choose_tm(M, n_j_blocks):
    """LHS tile rows: multiple of 16, capped per generation, >=2 parallel blocks when feasible."""
    _, tm_max, _ = _tpu_config()
    tm = min(tm_max, _round_up(M, 16))
    Mp = _round_up(M, tm)
    if n_j_blocks == 1 and Mp // tm < 2 and M >= 64:
        # Expose >=2 blocks on a "parallel" axis so both v7x TensorCores get work.
        tm = _round_up((M + 1) // 2, 16)
        Mp = _round_up(M, tm)
    return tm, Mp


# ----------------------------------------------------------------------------- Pallas kernels
def _matmul_bias_kernel(*refs, relu, has_res):
    """Single-K-step (weight-resident) matmul: bf16 MXU, f32 acc, fused bias/residual/ReLU."""
    if has_res:
        a_ref, b_ref, bias_ref, res_ref, o_ref = refs
    else:
        a_ref, b_ref, bias_ref, o_ref = refs
        res_ref = None
    y = jnp.dot(a_ref[...], b_ref[...], preferred_element_type=jnp.float32) + bias_ref[...]
    if has_res:
        y = y + res_ref[...].astype(jnp.float32)
    if relu:
        y = jnp.maximum(y, 0.0)
    o_ref[...] = y.astype(o_ref.dtype)


def _matmul_acc_kernel(*refs, relu, has_res):
    """Streaming fallback (multi K-step): f32 accumulator scratch + fused epilogue on last step."""
    if has_res:
        a_ref, b_ref, bias_ref, res_ref, o_ref, acc_ref = refs
    else:
        a_ref, b_ref, bias_ref, o_ref, acc_ref = refs
        res_ref = None

    k = pl.program_id(2)

    @pl.when(k == 0)
    def _():
        acc_ref[...] = jnp.zeros_like(acc_ref)

    acc_ref[...] += jnp.dot(a_ref[...], b_ref[...], preferred_element_type=jnp.float32)

    @pl.when(k == pl.num_programs(2) - 1)
    def _():
        y = acc_ref[...] + bias_ref[...]
        if has_res:
            y = y + res_ref[...].astype(jnp.float32)
        if relu:
            y = jnp.maximum(y, 0.0)
        o_ref[...] = y.astype(o_ref.dtype)


def _maxpool_kernel(p00_ref, p01_ref, p10_ref, p11_ref, o_ref, *, Ho, Wo):
    """3x3/stride-2/pad-1 max-pool from the four spatial parity planes of the padded input."""
    a = p00_ref[...]
    b = p01_ref[...]
    c = p10_ref[...]
    d = p11_ref[...]
    m = a[:, 0:Ho, 0:Wo, :]
    m = jnp.maximum(m, a[:, 0:Ho, 1:Wo + 1, :])
    m = jnp.maximum(m, a[:, 1:Ho + 1, 0:Wo, :])
    m = jnp.maximum(m, a[:, 1:Ho + 1, 1:Wo + 1, :])
    m = jnp.maximum(m, b[:, 0:Ho, 0:Wo, :])
    m = jnp.maximum(m, b[:, 1:Ho + 1, 0:Wo, :])
    m = jnp.maximum(m, c[:, 0:Ho, 0:Wo, :])
    m = jnp.maximum(m, c[:, 0:Ho, 1:Wo + 1, :])
    m = jnp.maximum(m, d[:, 0:Ho, 0:Wo, :])
    o_ref[...] = m


def _avgpool_fc_kernel(x_ref, w_ref, b_ref, o_ref, *, inv_hw):
    """Fused global average pool + fc: (bb, HW, C) -> (bb, Np) f32 logits, weight VMEM-resident."""
    pooled = jnp.sum(x_ref[...].astype(jnp.float32), axis=1) * inv_hw       # (bb, C)
    y = jnp.dot(pooled.astype(jnp.bfloat16), w_ref[...],
                preferred_element_type=jnp.float32) + b_ref[...]
    o_ref[...] = y


# ----------------------------------------------------------------------------- cached pallas_call builders
@functools.lru_cache(maxsize=None)
def _matmul_call(Mp, Kp, Np, tm, tk, tn, relu, has_res, out_dtype):
    vmem_limit, _, _ = _tpu_config()
    grid = (Np // tn, Mp // tm, Kp // tk)          # j outermost; k innermost ("arbitrary")
    in_specs = [
        pl.BlockSpec((tm, tk), lambda j, i, k: (i, k)),   # A (activations, bf16)
        pl.BlockSpec((tk, tn), lambda j, i, k: (k, j)),   # B (weights, bf16) - resident when tk=Kp, tn=Np
        pl.BlockSpec((1, tn), lambda j, i, k: (0, j)),    # bias (f32)
    ]
    if has_res:
        in_specs.append(pl.BlockSpec((tm, tn), lambda j, i, k: (i, j)))  # residual
    single_k = (Kp == tk)
    if single_k:
        kernel = functools.partial(_matmul_bias_kernel, relu=relu, has_res=has_res)
        scratch = []
    else:
        kernel = functools.partial(_matmul_acc_kernel, relu=relu, has_res=has_res)
        scratch = [pltpu.VMEM((tm, tn), jnp.float32)]
    return pl.pallas_call(
        kernel,
        out_shape=jax.ShapeDtypeStruct((Mp, Np), out_dtype),
        grid_spec=pltpu.PrefetchScalarGridSpec(
            num_scalar_prefetch=0,
            grid=grid,
            in_specs=in_specs,
            out_specs=pl.BlockSpec((tm, tn), lambda j, i, k: (i, j)),
            scratch_shapes=scratch,
        ),
        compiler_params=pltpu.CompilerParams(
            dimension_semantics=("parallel", "parallel", "arbitrary"),
            vmem_limit_bytes=vmem_limit,
        ),
    )


@functools.lru_cache(maxsize=None)
def _maxpool_call(B, Hr, Wr, C, Ho, Wo):
    vmem_limit, _, _ = _tpu_config()
    in_spec = pl.BlockSpec((1, Hr, Wr, C), lambda b: (b, 0, 0, 0))
    return pl.pallas_call(
        functools.partial(_maxpool_kernel, Ho=Ho, Wo=Wo),
        out_shape=jax.ShapeDtypeStruct((B, Ho, Wo, C), jnp.bfloat16),
        grid_spec=pltpu.PrefetchScalarGridSpec(
            num_scalar_prefetch=0,
            grid=(B,),
            in_specs=[in_spec, in_spec, in_spec, in_spec],
            out_specs=pl.BlockSpec((1, Ho, Wo, C), lambda b: (b, 0, 0, 0)),
        ),
        compiler_params=pltpu.CompilerParams(
            dimension_semantics=("parallel",), vmem_limit_bytes=vmem_limit),
    )


@functools.lru_cache(maxsize=None)
def _avgpool_fc_call(Bp, bb, HW, Cp, Np, inv_hw):
    vmem_limit, _, _ = _tpu_config()
    return pl.pallas_call(
        functools.partial(_avgpool_fc_kernel, inv_hw=inv_hw),
        out_shape=jax.ShapeDtypeStruct((Bp, Np), jnp.float32),
        grid_spec=pltpu.PrefetchScalarGridSpec(
            num_scalar_prefetch=0,
            grid=(Bp // bb,),
            in_specs=[pl.BlockSpec((bb, HW, Cp), lambda i: (i, 0, 0)),
                      pl.BlockSpec((Cp, Np), lambda i: (0, 0)),
                      pl.BlockSpec((1, Np), lambda i: (0, 0))],
            out_specs=pl.BlockSpec((bb, Np), lambda i: (i, 0)),
        ),
        compiler_params=pltpu.CompilerParams(
            dimension_semantics=("parallel",), vmem_limit_bytes=vmem_limit),
    )


# ----------------------------------------------------------------------------- matmul wrapper
def _matmul_fused(a, entry, relu, residual=None, out_dtype=jnp.bfloat16):
    """y[:M] = [relu]( a @ W + bias [+ residual] ); W/bias pre-padded, pre-scaled, bf16."""
    M, K = a.shape
    w, bias = entry["w"], entry["b"]
    Kp, Np = w.shape
    tk, tn = entry["tk"], entry["tn"]

    tm, Mp = _choose_tm(M, Np // tn)

    a_p = a.astype(jnp.bfloat16)
    if (Mp, Kp) != (M, K):
        a_p = jnp.pad(a_p, ((0, Mp - M), (0, Kp - K)))

    args = [a_p, w, bias]
    has_res = residual is not None
    if has_res:
        r = residual.astype(jnp.bfloat16)
        if r.shape != (Mp, Np):
            r = jnp.pad(r, ((0, Mp - r.shape[0]), (0, Np - r.shape[1])))
        args.append(r)

    out = _matmul_call(Mp, Kp, Np, tm, tk, tn, bool(relu), has_res, out_dtype)(*args)
    return out if Mp == M else out[:M]


# ----------------------------------------------------------------------------- im2col + conv wrappers
def _im2col(x, kh, kw, stride, pad, pad_value=None):
    """x: NHWC -> (B*Ho*Wo, kh*kw*C) patches (tap-major, channel-minor), Ho, Wo."""
    if pad:
        B, H, W, C = x.shape
        if pad_value is None:
            x = jnp.pad(x, ((0, 0), (pad, pad), (pad, pad), (0, 0)))
        else:
            bg = jnp.broadcast_to(pad_value.astype(x.dtype),
                                  (B, H + 2 * pad, W + 2 * pad, C))
            x = bg.at[:, pad:pad + H, pad:pad + W, :].set(x)
    B, H, W, C = x.shape
    Ho = (H - kh) // stride + 1
    Wo = (W - kw) // stride + 1
    cols = []
    for i in range(kh):
        for j in range(kw):
            cols.append(
                x[:, i: i + stride * (Ho - 1) + 1: stride,
                     j: j + stride * (Wo - 1) + 1: stride, :]
            )
    patches = cols[0] if len(cols) == 1 else jnp.concatenate(cols, axis=-1)
    return patches.reshape(B * Ho * Wo, kh * kw * C), Ho, Wo


def conv_bn(x, entry, stride, pad, relu, residual=None, pad_value=None):
    """Conv2d + folded BatchNorm (+ fused residual add) (+ ReLU). x: NHWC bf16.
    Output keeps padded (stored) channels Np; padded channels are exact zeros."""
    B = x.shape[0]
    a, Ho, Wo = _im2col(x, entry["kh"], entry["kw"], stride, pad, pad_value)
    res = None if residual is None else residual.reshape(B * Ho * Wo, residual.shape[-1])
    y = _matmul_fused(a, entry, relu=relu, residual=res, out_dtype=jnp.bfloat16)
    return y.reshape(B, Ho, Wo, entry["Np"])


def maxpool_3x3_s2(x):
    """MaxPool2d(kernel=3, stride=2, padding=1). x: NHWC bf16 (C multiple of 128 here)."""
    B, H, W, C = x.shape
    Ho, Wo = (H - 1) // 2 + 1, (W - 1) // 2 + 1
    Hp2, Wp2 = _round_up(H + 2, 2), _round_up(W + 2, 2)
    xp = jnp.pad(x, ((0, 0), (1, Hp2 - H - 1), (1, Wp2 - W - 1), (0, 0)),
                 constant_values=float("-inf"))
    # Split once into 4 spatial parity planes (single cheap XLA gather instead of 9 tap copies).
    xr = xp.reshape(B, Hp2 // 2, 2, Wp2 // 2, 2, C)
    p00 = xr[:, :, 0, :, 0, :]
    p01 = xr[:, :, 0, :, 1, :]
    p10 = xr[:, :, 1, :, 0, :]
    p11 = xr[:, :, 1, :, 1, :]
    return _maxpool_call(B, Hp2 // 2, Wp2 // 2, C, Ho, Wo)(p00, p01, p10, p11)


def avgpool_fc(x, fc_entry):
    """Fused global average pool + fc. x: NHWC bf16 (C == fc K). Returns (B, 1000) f32."""
    B, H, W, C = x.shape
    HW = H * W
    xr = x.reshape(B, HW, C)
    w, bias = fc_entry["w"], fc_entry["b"]
    Kp, Np = w.shape
    if Kp != C:
        xr = jnp.pad(xr, ((0, 0), (0, 0), (0, Kp - C)))
    bb = 8
    Bp = _round_up(B, bb)
    if Bp != B:
        xr = jnp.pad(xr, ((0, Bp - B), (0, 0), (0, 0)))
    out = _avgpool_fc_call(Bp, bb, HW, Kp, Np, 1.0 / HW)(xr, w, bias)
    return out[:B, :fc_entry["N"]]


def bottleneck(x, blk):
    identity = x
    out = conv_bn(x, blk["conv1"], stride=1, pad=0, relu=True)
    out = conv_bn(out, blk["conv2"], stride=blk["stride"], pad=1, relu=True)
    if "downsample" in blk:
        identity = conv_bn(x, blk["downsample"], stride=blk["stride"], pad=0, relu=False)
    # conv3 with fused residual add + ReLU epilogue.
    return conv_bn(out, blk["conv3"], stride=1, pad=0, relu=True, residual=identity)


# ----------------------------------------------------------------------------- parameter build (fold + pre-pack)
def _prepare_dense(w_kn, bias_n):
    """Pack a (K, N) weight + (N,) bias: choose (resident) tiles, pad, cast weights to bf16."""
    K, N = w_kn.shape
    Kp, Np, tk, tn = _plan_kn(K, N)
    return {
        "w": jnp.pad(w_kn, ((0, Kp - K), (0, Np - N))).astype(jnp.bfloat16),
        "b": jnp.pad(bias_n.reshape(1, N), ((0, 0), (0, Np - N))).astype(jnp.float32),
        "K": K, "N": N, "Np": Np, "tk": tk, "tn": tn, "kh": 1, "kw": 1,
    }


def _prepare_conv(w, gamma, beta, mean, var, eps=1e-5,
                  in_scale=None, in_sub=None, cin_pad=None):
    """Fold BN (and optionally the input normalization) into the conv weight/bias and pre-pack.
    `cin_pad` zero-pads the input-channel axis so K matches the (padded) stored channels of the
    producing layer exactly (padded input channels are exact zeros -> fold is exact)."""
    cout, cin, kh, kw = w.shape
    bn_scale = gamma / jnp.sqrt(var + eps)          # (Cout,)
    bn_bias = beta - mean * bn_scale                # (Cout,)
    w_eff, bias_eff = w, bn_bias
    if in_scale is not None:
        # conv(x*s - c, W) == conv(x_pad(c/s), W*s) - sum_{i,kh,kw} W*c   (exact, given the raw
        # input is padded with c/s = mean*255 so the pad region also obeys x*s - c == 0).
        corr = jnp.einsum("oikl,i->o", w, in_sub)
        w_eff = w * in_scale[None, :, None, None]
        bias_eff = bn_bias - bn_scale * corr
    w_eff = w_eff * bn_scale[:, None, None, None]
    if cin_pad is not None and cin_pad > cin:
        w_eff = jnp.pad(w_eff, ((0, 0), (0, cin_pad - cin), (0, 0), (0, 0)))
        cin = cin_pad
    K = kh * kw * cin
    bmat = jnp.transpose(w_eff, (2, 3, 1, 0)).reshape(K, cout)   # tap-major, channel-minor rows
    entry = _prepare_dense(bmat, bias_eff)
    entry["kh"], entry["kw"] = kh, kw
    return entry


def build_resnet50_params(base_key):
    cnt = [0]

    def nk():
        cnt[0] += 1
        return jax.random.fold_in(base_key, cnt[0])

    mean = jnp.array([0.485, 0.456, 0.406], jnp.float32)
    std = jnp.array([0.229, 0.224, 0.225], jnp.float32)
    in_scale = 1.0 / (std * 255.0)
    in_sub = mean / std

    def conv_entry(cout, cin, kh, kw, cin_pad=None, fold_input=False):
        fan_in = cin * kh * kw
        w = jax.random.normal(nk(), (cout, cin, kh, kw), jnp.float32) * jnp.sqrt(2.0 / fan_in)
        gamma = jnp.ones((cout,), jnp.float32)
        beta = jnp.zeros((cout,), jnp.float32)
        running_mean = jnp.zeros((cout,), jnp.float32)
        running_var = jnp.ones((cout,), jnp.float32)
        return _prepare_conv(w, gamma, beta, running_mean, running_var,
                             in_scale=in_scale if fold_input else None,
                             in_sub=in_sub if fold_input else None,
                             cin_pad=cin_pad)

    params = {
        "conv1": conv_entry(64, 3, 7, 7, fold_input=True),
        "conv1_pad_value": mean * 255.0,   # raw-space pad value == normalized zero
    }
    cfg = [(3, 64, 1), (4, 128, 2), (6, 256, 2), (3, 512, 2)]   # (blocks, width, stride)
    in_ch = 64
    in_store = params["conv1"]["Np"]       # stored channels after the stem (64 padded -> 128)
    layers = []
    for n_blocks, width, stride in cfg:
        blocks = []
        for bi in range(n_blocks):
            s = stride if bi == 0 else 1
            c1 = conv_entry(width, in_ch, 1, 1, cin_pad=in_store)
            c2 = conv_entry(width, width, 3, 3, cin_pad=c1["Np"])
            c3 = conv_entry(width * 4, width, 1, 1, cin_pad=c2["Np"])
            blk = {"stride": s, "conv1": c1, "conv2": c2, "conv3": c3}
            if s != 1 or in_ch != width * 4:
                blk["downsample"] = conv_entry(width * 4, in_ch, 1, 1, cin_pad=in_store)
            blocks.append(blk)
            in_ch = width * 4
            in_store = c3["Np"]
        layers.append(blocks)
    params["layers"] = layers

    fc_w = jax.random.normal(nk(), (1000, 2048), jnp.float32) * (1.0 / jnp.sqrt(2048.0))
    fc_b = jnp.zeros((1000,), jnp.float32)
    params["fc"] = _prepare_dense(fc_w.T, fc_b)    # stored pre-transposed (2048, 1024-padded)
    return params


# ----------------------------------------------------------------------------- full Model.forward
def model_forward(params, x_nchw):
    """Replicates: x.float(); x = x * (1/(std*255)) - mean/std; resnet50(x).
    The normalization is folded into conv1 (exactly, via mean*255 raw-space padding)."""
    x = x_nchw.astype(jnp.bfloat16).transpose(0, 2, 3, 1)   # NCHW uint8 -> NHWC bf16 raw pixels

    # stem (normalization + BN folded into conv1's weights/bias; 128 stored channels, lane-dense)
    x = conv_bn(x, params["conv1"], stride=2, pad=3, relu=True,
                pad_value=params["conv1_pad_value"])
    x = maxpool_3x3_s2(x)

    # 4 stages of bottleneck blocks (residual add+ReLU fused into conv3's epilogue)
    for blocks in params["layers"]:
        for blk in blocks:
            x = bottleneck(x, blk)

    # fused global average pool + fc (f32 logits)
    return avgpool_fc(x, params["fc"])   # (B, 1000)


# ----------------------------------------------------------------------------- main
if __name__ == "__main__":
    key = jax.random.PRNGKey(0)
    k_params, k_x = jax.random.split(key)

    params = build_resnet50_params(k_params)

    # Small deterministic "image" batch: uint8 pixels, NCHW (PyTorch layout).
    # 32x32 is the smallest spatial size that survives the /32 total stride.
    x = jax.random.randint(k_x, (2, 3, 32, 32), 0, 256, dtype=jnp.int32).astype(jnp.uint8)

    out = model_forward(params, x)
    out = jax.block_until_ready(out)

    assert out.shape == (2, 1000)
    assert bool(jnp.all(jnp.isfinite(out)))
    print("KERNEL_OK")
</pallas_src>

<mosaic_0001>
module attributes {stable_mosaic.version = 11 : i64} {
  func.func @_matmul_bias_kernel(%arg0: i32, %arg1: i32, %arg2: i32, %arg3: memref<256x256xbf16, #tpu.memory_space<vmem>>, %arg4: memref<256x128xbf16, #tpu.memory_space<vmem>>, %arg5: memref<1x128xf32, #tpu.memory_space<vmem>>, %arg6: memref<256x128xbf16, #tpu.memory_space<vmem>>) attributes {dimension_semantics = [#tpu.dimension_semantics<parallel>, #tpu.dimension_semantics<parallel>, #tpu.dimension_semantics<arbitrary>], iteration_bounds = array<i64: 1, 2, 1>, scalar_prefetch = 0 : i64, scratch_operands = 0 : i64, tpu.core_type = #tpu.core_type<tc>, window_params = [{transform_indices = @transform_0, window_bounds = array<i64: 256, 256>}, {transform_indices = @transform_1, window_bounds = array<i64: 256, 128>}, {transform_indices = @transform_2, window_bounds = array<i64: 1, 128>}, {transform_indices = @transform_3, window_bounds = array<i64: 256, 128>}]} {
    %c0 = arith.constant 0 : index
    %c0_0 = arith.constant 0 : index
    %0 = vector.load %arg3[%c0, %c0_0] : memref<256x256xbf16, #tpu.memory_space<vmem>>, vector<256x256xbf16>
    %c0_1 = arith.constant 0 : index
    %c0_2 = arith.constant 0 : index
    %1 = vector.load %arg4[%c0_1, %c0_2] : memref<256x128xbf16, #tpu.memory_space<vmem>>, vector<256x128xbf16>
    %cst = arith.constant dense<0.000000e+00> : vector<256x128xf32>
    %2 = tpu.matmul %0, %1, %cst {dimension_numbers = #tpu.dot_dimension_numbers<[1], [0], [0], [1], [0, 0, 1, 1], [], []>} : vector<256x256xbf16>, vector<256x128xbf16>, vector<256x128xf32> -> vector<256x128xf32>
    %c0_3 = arith.constant 0 : index
    %c0_4 = arith.constant 0 : index
    %3 = vector.load %arg5[%c0_3, %c0_4] : memref<1x128xf32, #tpu.memory_space<vmem>>, vector<1x128xf32>
    %4 = vector.broadcast %3 : vector<1x128xf32> to vector<256x128xf32>
    %5 = arith.addf %2, %4 : vector<256x128xf32>
    %cst_5 = arith.constant 0.000000e+00 : f32
    %6 = vector.broadcast %cst_5 : f32 to vector<256x128xf32>
    %7 = arith.maximumf %5, %6 : vector<256x128xf32>
    %8 = arith.truncf %7 : vector<256x128xf32> to vector<256x128xbf16>
    %c0_6 = arith.constant 0 : index
    %c0_7 = arith.constant 0 : index
    %9 = vector.load %arg6[%c0_6, %c0_7] : memref<256x128xbf16, #tpu.memory_space<vmem>>, vector<256x128xbf16>
    tpu.vector_store %arg6[%c0_6, %c0_7], %8 {strides = array<i32>} : memref<256x128xbf16, #tpu.memory_space<vmem>>, vector<256x128xbf16>,
    return
  }
  func.func @transform_0(%arg0: i32, %arg1: i32, %arg2: i32) -> (i32, i32) {
    %c0_i32 = arith.constant 0 : i32
    return %arg1, %arg2 : i32, i32
  }
  func.func @transform_1(%arg0: i32, %arg1: i32, %arg2: i32) -> (i32, i32) {
    %c0_i32 = arith.constant 0 : i32
    return %arg2, %arg0 : i32, i32
  }
  func.func @transform_2(%arg0: i32, %arg1: i32, %arg2: i32) -> (i32, i32) {
    %c0_i32 = arith.constant 0 : i32
    %c0_i32_0 = arith.constant 0 : i32
    return %c0_i32, %arg0 : i32, i32
  }
  func.func @transform_3(%arg0: i32, %arg1: i32, %arg2: i32) -> (i32, i32) {
    %c0_i32 = arith.constant 0 : i32
    return %arg1, %arg0 : i32, i32
  }
}

</mosaic_0001>

<bundles_post_ra>
// kernel: tpu_custom_call.1
= control target key start
LH: loop header
LB: loop body
LE: loop exit
PB: predicated region body
PF: predicated region fallthrough
CT: control target
= control target key end

     0   :  { %8 = vsyncpa [#allocation3], 0  ;;  %s2056_s0 = inlined_call_operand.hbm [shape: bf16[512,256], index: 0, kind: input, shape index: {}]   ;;  %s2057_s1 = inlined_call_operand.hbm [shape: bf16[256,128], index: 1, kind: input, shape index: {}]   ;;  %s2058_s2 = inlined_call_operand.vmem [shape: f32[1,128], index: 2, kind: input, shape index: {}]   ;;  %s2059_s3 = inlined_call_operand.hbm [shape: bf16[512,128], index: 3, kind: output, shape index: {}]  }
   0x1   :  { %10 = vsyncpa [#allocation3 + $0x1], 0 }
   0x2   :  { %11 = vsyncpa [#allocation6], 0 }
   0x3   :  { %12 = vsyncpa [#allocation4], 0 }
   0x4   :  { %14 = vsyncpa [#allocation4 + $0x1], 0  ;;  %s1746_s12 = smov 0   ;;  %s1748_s13 = smov 0  }
   0x5   :  { %s1750_s14 = smov 0   ;;  %s1752_s15 = smov 0  }
   0x6   :  { %s1754_s16 = smov 0   ;;  %s1756_s17 = smov 0  }
   0x7 LB: > { %s1070_s18 = sadd.s32 4294967295, %s1715_s17   ;;  %s1071_s19 = sadd.s32 4294967294, %s1715_s17   ;;  %s1715_s17 = sphi %s1756_s17, %s20_s17   ;;  %s1711_s16 = sphi %s1754_s16, %s2083_s16   ;;  %s1707_s15 = sphi %s1752_s15, %s2082_s15   ;;  %s1703_s14 = sphi %s1750_s14, %s2081_s14   ;;  %s1699_s13 = sphi %s1748_s13, %s2080_s13   ;;  %s1695_s12 = sphi %s1746_s12, %s2079_s12  }
   0x8   : > { %p61_p0 = scmp.ne.s32.totalorder %s1699_s13, %s1695_s12  ;;  %p1780_p1 = scmp.eq.s32.totalorder %s1070_s18, 0 }
   0x9   : > { %p1784_p2 = scmp.eq.s32.totalorder %s1070_s18, 1  ;;  %p147_p3 = scmp.eq.s32.totalorder %s1071_s19, 1 }
   0xa   : > { %s2064_s20 = scalar_select %p1780_p1, 1, 0 }
   0xb   : > { %s2065_s21 = scalar_select %p1784_p2, 1, 0 }
   0xc   : > { %p1790_p4 = por %p1780_p1, %p61_p0  ;;  %p1072_p5 = scmp.ge.s32.totalorder %s1715_s17, 1 }
   0xd   : > { %p1795_p6 = por %p147_p3, %p61_p0  ;;  %p154_p7 = scmp.lt.s32.totalorder %s1715_s17, 3 }
   0xe   : > { %s2066_s22 = scalar_select %p1790_p4, 1, 0 }
   0xf   : > { %s2067_s23 = scalar_select %p1795_p6, 1, 0 }
  0x10   : > { %p1800_p8 = pnand %p1072_p5, %p154_p7  ;;  %s1717_s25 = smov [#allocation5]  }
  0x11   : > { %s170_s26 = sshll.u32 %s1717_s25, 4  ;;  %s35_s28 = sadd.s32 1, %s1711_s16  ;;  %s171_s26 = int_to_ptr.vmem [resolvable:$true] %s170_s26 }
  0x12   : > { %s2068_s24 = scalar_select %p1800_p8, 1, 0 }
  0x13   : > { %p1436_p9 = pneg %p1800_p8  ;;  %s1571_s4 = scalar_lea.hbm %s2057_s1, 2048 }
  0x14   : > { %p1572_p12 = scmp.ne.s32.totalorder %s2057_s1, %s1571_s4  ;;  %p1578_p5 = scmp.lt.u32.totalorder %s1571_s4, %s2057_s1 }
  0x15   : > { %p1809_p11 = pnand %p1436_p9, %p1780_p1 }
  0x17   : > { %p1573_p13 = pneg %p1809_p11 }
  0x19   : > { %p1574_p0 = pnand %p1573_p13, %p1572_p12 }
  0x1b   : > { %p1575_p3 = pneg %p1574_p0 }
  0x1d   : > { %p1580_p7 = pnand %p1578_p5, %p1575_p3 }
  0x1f   : > { %1583 = shalt.err (!%p1580_p7)
}
  0x20   : > { %s1584_s9 = scalar_lea.vmem %s171_s26, 2048  ;;  %p1592_p1 = scmp.lt.s32.totalorder %s171_s26, %s171_s26 }
  0x21   : > { %p1585_p9 = scmp.ne.s32.totalorder %s171_s26, %s1584_s9  ;;  %p1593_p4 = scmp.lt.s32.totalorder %s1584_s9, %s1584_s9 }
  0x23   : > { %p1587_p10 = pnand %p1585_p9, %p1573_p13  ;;  %p1594_p8 = por %p1593_p4, %p1592_p1 }
  0x25   : > { %p1588_p6 = pneg %p1587_p10 }
  0x27   : > { %p1595_p2 = pnand %p1594_p8, %p1588_p6 }
  0x29   : > { %1598 = shalt.err (!%p1595_p2)
}
  0x2a   : > { %s1718_s10 = smov 64   ;;  %s1719_s11 = smov 4  }
  0x2b   : > { %1439 = dma.hbm_to_vmem [thread:$0]  (!%p1809_p11), %s2057_s1, 2048, %s171_s26, [#allocation6], %s1718_s10, %s1718_s10, %s1719_s11  }
  0x2c   : > { %p37_p1 = scmp.ge.s32.totalorder %s35_s28, 2  ;;  %s48_s25 = sadd.s32 1, %s1703_s14 }
  0x2d   : > { %p55_p2 = scmp.ne.s32.totalorder %s1703_s14, %s1699_s13  ;;  %p56_p4 = scmp.eq.s32.totalorder %s1715_s17, 0 }
  0x2e   : > { %s2085_s28 = smov (%p37_p1, %s35_s28), 0  ;;  %p2071_p8 = scmp.ne.s32.totalorder %s2065_s21, 0 }
  0x2f   : > { %p1836_p6 = por %p56_p4, %p55_p2  ;;  %s43_s27 = ssub.s32 %s1711_s16, %s2085_s28 }
  0x30   : > { %p1842_p10 = por %p2071_p8, %p55_p2  ;;  %p1449_p12 = scmp.lt.s32.totalorder %s1715_s17, 2 }
  0x31   : > { %p46_p11 = scmp.eq.s32.totalorder %s43_s27, 0  ;;  %s190_s26 = sand.u32 1, %s1703_s14  }
  0x32   : > { %s1076_s4 = sshll.u32 %s190_s26, 8  ;;  %s1171_s6 = sshll.u32 %s1711_s16, 12 }
  0x33   : > { %s1851_s5 = scalar_select %p46_p11, %s1703_s14, %s48_s25  }
  0x34   : > { %s1857_s9 = scalar_lea.hbm %s2056_s0, %s1171_s6  ;;  %s194_s21 = scalar_lea.vmem [#allocation2], %s1076_s4 }
  0x35   : > { %s204_s10 = sshll.u32 %s194_s21, 4  ;;  %p1863_p13 = pnand %p1449_p12, %p1836_p6  ;;  %s1859_s10 = int_to_ptr.vmem [resolvable:$true] %s204_s10 }
  0x36   : > { %s1867_s18 = scalar_lea.sflag [#allocation3], %s190_s26  ;;  %s1599_s19 = scalar_lea.hbm %s1857_s9, 4096 }
  0x37   : > { %p1600_p0 = scmp.ne.s32.totalorder %s1857_s9, %s1599_s19  ;;  %p1601_p3 = pneg %p1863_p13 }
  0x38   : > { %s1604_s29 = scalar_lea.hbm %s2056_s0, 8192  ;;  %p1605_p9 = scmp.lt.u32.totalorder %s1857_s9, %s2056_s0 }
  0x39   : > { %p1602_p5 = pnand %p1601_p3, %p1600_p0  ;;  %p1606_p1 = scmp.lt.u32.totalorder %s1604_s29, %s1599_s19 }
  0x3a   : > { %p1608_p4 = scmp.lt.u32.totalorder %s1599_s19, %s1857_s9 }
  0x3b   : > { %p1603_p7 = pneg %p1602_p5  ;;  %p1607_p2 = por %p1606_p1, %p1605_p9 }
  0x3d   : > { %p1609_p6 = por %p1608_p4, %p1607_p2 }
  0x3f   : > { %p1610_p8 = pnand %p1609_p6, %p1603_p7 }
  0x41   : > { %1613 = shalt.err (!%p1610_p8)
}
  0x42   : > { %s1614_s26 = scalar_lea.vmem %s1859_s10, 4096  ;;  %s1720_s7 = smov [#allocation2]  }
  0x43   : > { %p1615_p12 = scmp.ne.s32.totalorder %s1859_s10, %s1614_s26  ;;  %s1619_s8 = sshll.u32 %s1720_s7, 4  ;;  %s1620_s8 = int_to_ptr.vmem [resolvable:$false] %s1619_s8 }
  0x44   : > { %s1621_s21 = scalar_lea.vmem %s1620_s8, 8192  ;;  %p1622_p5 = scmp.lt.s32.totalorder %s1859_s10, %s1620_s8 }
  0x45   : > { %p1617_p11 = pnand %p1615_p12, %p1601_p3  ;;  %p1623_p9 = scmp.lt.s32.totalorder %s1621_s21, %s1614_s26 }
  0x47   : > { %p1618_p0 = pneg %p1617_p11  ;;  %p1624_p1 = por %p1623_p9, %p1622_p5 }
  0x49   : > { %p1625_p2 = pnand %p1624_p1, %p1618_p0 }
  0x4b   : > { %1628 = shalt.err (!%p1625_p2)
}
  0x4c   : > { %s1721_s19 = smov 128   ;;  %s1722_s25 = smov 8  }
  0x4d   : > { %1443 = dma.hbm_to_vmem [thread:$0]  (!%p1863_p13), %s1857_s9, 4096, %s1859_s10, %s1867_s18, %s1721_s19, %s1721_s19, %s1722_s25  }
  0x4e   : > { %p2074_p3 = scmp.ne.s32.totalorder %s2068_s24, 0 }
  0x4f   : > { %s1898_s27 = sand.u32 (!%p2074_p3), 1, %s1699_s13   ;;  %p2075_p7 = scmp.ne.s32.totalorder (!%p2074_p3), %s2066_s22, 0 }
  0x50   : > { %216 = sbr.rel (%p2074_p3) target bundleno = 419 (0x1a3), region = 32  ;;  %s1081_s29 = sshll.u32 (!%p2074_p3), %s1898_s27, 8 }
  0x51   : > { %s219_s4 = scalar_lea.sflag (!%p2074_p3), [#allocation3], %s1898_s27  ;;  %s1902_s6 = scalar_lea.vmem (!%p2074_p3), [#allocation2], %s1081_s29 }
  0x57   : > { %1682 = dma.done.wait (%p2075_p7), %s219_s4, 4096  }
  0x58   : > { %1684 = vsyncadd (%p2075_p7), %s219_s4, 4294963200  ;;  %p2076_p13 = scmp.ne.s32.totalorder %s2064_s20, 0 }
  0x5a   : > { %1686 = dma.done.wait (%p2076_p13), [#allocation6], 2048  }
  0x5b   : > { %1688 = vsyncadd (%p2076_p13), [#allocation6], 4294965248  ;;  %v1507_v0 = vld [vmem:[#allocation5 + $0x40] sm:$0xff]   ;;  %v1509_v2 = vld [vmem:[#allocation5 + $0x48] sm:$0xff]   ;;  %s1083_s24 = sshll.u32 %s1898_s27, 7  ;;  %s1204_s10 = sshll.u32 %s1707_s15, 11 }
  0x5c   : > { %v1508_v1 = vld [vmem:[#allocation5] sm:$0xff]   ;;  %1300 = vmatprep.subr.bf16.mxu0 %v1507_v0  ;;  %1412 = vmatprep.subr.bf16.mxu1 %v1507_v0  ;;  %v1510_v3 = vld [vmem:[#allocation5 + $0x8] sm:$0xff]   ;;  %v1511_v4 = vld [vmem:[#allocation5 + $0x50] sm:$0xff]   ;;  %s1954_s9 = scalar_lea.vmem [#allocation7], %s1083_s24  ;;  %s2003_s7 = scalar_lea.hbm %s2059_s3, %s1204_s10 }
  0x5d   : > { %1301 = vmatpush3.bf16.msra.mxu0 %v1508_v1  ;;  %1420 = vmatpush3.bf16.msra.mxu1 %v1508_v1  ;;  %v1512_v5 = vld [vmem:[#allocation5 + $0x10] sm:$0xff]   ;;  %v1513_v6 = vld [vmem:[#allocation5 + $0x58] sm:$0xff]   ;;  %v1515_v8 = vld [vmem:[#allocation5 + $0x60] sm:$0xff]   ;;  %s955_s11 = sshll.u32 %s1954_s9, 4  ;;  %s941_s15 = scalar_lea.sflag [#allocation4], %s1898_s27  ;;  %s2005_s11 = int_to_ptr.vmem [resolvable:$true] %s955_s11 }
  0x5e   : > { %1302 = vmatprep.subr.bf16.mxu0 %v1509_v2  ;;  %1413 = vmatprep.subr.bf16.mxu1 %v1509_v2  ;;  %v1514_v7 = vld [vmem:[#allocation5 + $0x18] sm:$0xff]   ;;  %v1516_v9 = vld [vmem:[#allocation5 + $0x20] sm:$0xff]   ;;  %v1517_v10 = vld [vmem:[#allocation5 + $0x68] sm:$0xff]   ;;  %s1629_s8 = scalar_lea.vmem %s2005_s11, 2048  ;;  %s1723_s21 = smov [#allocation7]  }
  0x5f   : > { %v1525_v11 = vld [vmem:[%s1902_s6 + $0x4] ss:$8 sps:$4 sm:$0xff]   ;;  %v1519_v14 = vld [vmem:[#allocation5 + $0x70] sm:$0xff]   ;;  %v1521_v16 = vld [vmem:[#allocation5 + $0x78] sm:$0xff]   ;;  %p1630_p4 = scmp.ne.s32.totalorder %s2005_s11, %s1629_s8  ;;  %s1633_s19 = sshll.u32 %s1723_s21, 4  ;;  %s1634_s19 = int_to_ptr.vmem [resolvable:$false] %s1633_s19 }
  0x60   : > { %v1528_v12 = vld [vmem:[%s1902_s6 + $0x84] ss:$8 sps:$4 sm:$0xff]   ;;  %619 = vmatprep.mubr.bf16.mxu0 %v1525_v11  ;;  %v1520_v15 = vld [vmem:[#allocation5 + $0x30] sm:$0xff]   ;;  %v1522_v17 = vld [vmem:[#allocation5 + $0x38] sm:$0xff]   ;;  %s1635_s25 = scalar_lea.vmem %s1634_s19, 4096  ;;  %p1636_p12 = scmp.lt.s32.totalorder %s2005_s11, %s1634_s19 }
  0x61   : > { %1303 = vmatpush3.bf16.msra.mxu0 %v1510_v3  ;;  %1421 = vmatpush3.bf16.msra.mxu1 %v1510_v3  ;;  %v1518_v13 = vld [vmem:[#allocation5 + $0x28] sm:$0xff]   ;;  %v1529_v20 = vld [vmem:[%s1902_s6 + $0x14] ss:$8 sps:$4 sm:$0xff]   ;;  %v1533_v22 = vld [vmem:[%s1902_s6 + $0x10] ss:$8 sps:$4 sm:$0xff]   ;;  %p1631_p6 = pnand %p1630_p4, %p1842_p10  ;;  %p1637_p11 = scmp.lt.s32.totalorder %s1635_s25, %s1629_s8 }
  0x62   : > { %1304 = vmatprep.subr.bf16.mxu0 %v1511_v4  ;;  %1414 = vmatprep.subr.bf16.mxu1 %v1511_v4  ;;  %v1523_v18 = vld [vmem:[%s1902_s6] ss:$8 sps:$4 sm:$0xff]   ;;  %v1531_v21 = vld [vmem:[%s1902_s6 + $0x94] ss:$8 sps:$4 sm:$0xff]   ;;  %v1534_v23 = vld [vmem:[%s1902_s6 + $0x90] ss:$8 sps:$4 sm:$0xff]  }
  0x63   : > { %683 = vmatprep.mubr.bf16.mxu1 %v1528_v12  ;;  %v1526_v19 = vld [vmem:[%s1902_s6 + $0x80] ss:$8 sps:$4 sm:$0xff]   ;;  %v1535_v24 = vld [vmem:[%s1902_s6 + $0x24] ss:$8 sps:$4 sm:$0xff]   ;;  %v1541_v28 = vld [vmem:[%s1902_s6 + $0x34] ss:$8 sps:$4 sm:$0xff]   ;;  %p1632_p8 = pneg %p1631_p6  ;;  %p1638_p0 = por %p1637_p11, %p1636_p12 }
  0x64   : > { %v1537_v25 = vld [vmem:[%s1902_s6 + $0xa4] ss:$8 sps:$4 sm:$0xff]   ;;  %v1539_v26 = vld [vmem:[%s1902_s6 + $0x20] ss:$8 sps:$4 sm:$0xff]   ;;  %v1543_v29 = vld [vmem:[%s1902_s6 + $0xb4] ss:$8 sps:$4 sm:$0xff]  }
  0x65   : > { %1305 = vmatpush3.bf16.msra.mxu0 %v1512_v5  ;;  %1422 = vmatpush3.bf16.msra.mxu1 %v1512_v5  ;;  %v1540_v27 = vld [vmem:[%s1902_s6 + $0xa0] ss:$8 sps:$4 sm:$0xff]   ;;  %v1545_v30 = vld [vmem:[%s1902_s6 + $0x30] ss:$8 sps:$4 sm:$0xff]   ;;  %v1547_v32 = vld [vmem:[%s1902_s6 + $0x44] ss:$8 sps:$4 sm:$0xff]   ;;  %p1639_p5 = pnand %p1638_p0, %p1632_p8 }
  0x66   : > { %1306 = vmatprep.subr.bf16.mxu0 %v1513_v6  ;;  %1415 = vmatprep.subr.bf16.mxu1 %v1513_v6  ;;  %v1546_v31 = vld [vmem:[%s1902_s6 + $0xb0] ss:$8 sps:$4 sm:$0xff]   ;;  %v1549_v33 = vld [vmem:[%s1902_s6 + $0xc4] ss:$8 sps:$4 sm:$0xff]   ;;  %v1551_v34 = vld [vmem:[%s1902_s6 + $0x40] ss:$8 sps:$4 sm:$0xff]  }
  0x67   : > { %v1552_v35 = vld [vmem:[%s1902_s6 + $0xc0] ss:$8 sps:$4 sm:$0xff]   ;;  %v1553_v36 = vld [vmem:[%s1902_s6 + $0x54] ss:$8 sps:$4 sm:$0xff]   ;;  %v1557_v38 = vld [vmem:[%s1902_s6 + $0x50] ss:$8 sps:$4 sm:$0xff]  }
  0x68   : > { %v1555_v37 = vld [vmem:[%s1902_s6 + $0xd4] ss:$8 sps:$4 sm:$0xff]   ;;  %v1558_v39 = vld [vmem:[%s1902_s6 + $0xd0] ss:$8 sps:$4 sm:$0xff]   ;;  %v1559_v40 = vld [vmem:[%s1902_s6 + $0x64] ss:$8 sps:$4 sm:$0xff]  }
  0x69   : > { %1307 = vmatpush3.bf16.msra.mxu0 %v1514_v7  ;;  %1423 = vmatpush3.bf16.msra.mxu1 %v1514_v7  ;;  %v1561_v41 = vld [vmem:[%s1902_s6 + $0xe4] ss:$8 sps:$4 sm:$0xff]   ;;  %v1563_v42 = vld [vmem:[%s1902_s6 + $0x60] ss:$8 sps:$4 sm:$0xff]   ;;  %v1565_v44 = vld [vmem:[%s1902_s6 + $0x74] ss:$8 sps:$4 sm:$0xff]  }
  0x6a   : > { %1308 = vmatprep.subr.bf16.mxu0 %v1515_v8  ;;  %1416 = vmatprep.subr.bf16.mxu1 %v1515_v8  ;;  %v1564_v43 = vld [vmem:[%s1902_s6 + $0xe0] ss:$8 sps:$4 sm:$0xff]   ;;  %v1567_v45 = vld [vmem:[%s1902_s6 + $0xf4] ss:$8 sps:$4 sm:$0xff]   ;;  %v1569_v46 = vld [vmem:[%s1902_s6 + $0x70] ss:$8 sps:$4 sm:$0xff]  }
  0x6b   : > { %v1570_v47 = vld [vmem:[%s1902_s6 + $0xf0] ss:$8 sps:$4 sm:$0xff]   ;;  %v1947_v50 = vld [vmem:[%s2058_s2] ss:$0 sm:$0xff] }
  0x6d   : > { %1309 = vmatpush3.bf16.msra.mxu0 %v1516_v9  ;;  %1424 = vmatpush3.bf16.msra.mxu1 %v1516_v9 }
  0x6e   : > { %1310 = vmatprep.subr.bf16.mxu0 %v1517_v10  ;;  %1417 = vmatprep.subr.bf16.mxu1 %v1517_v10 }
  0x71   : > { %1311 = vmatpush3.bf16.msra.mxu0 %v1518_v13  ;;  %1425 = vmatpush3.bf16.msra.mxu1 %v1518_v13 }
  0x72   : > { %1312 = vmatprep.subr.bf16.mxu0 %v1519_v14  ;;  %1418 = vmatprep.subr.bf16.mxu1 %v1519_v14 }
  0x75   : > { %1313 = vmatpush3.bf16.msra.mxu0 %v1520_v15  ;;  %1426 = vmatpush3.bf16.msra.mxu1 %v1520_v15 }
  0x76   : > { %1314 = vmatprep.subr.bf16.mxu0 %v1521_v16  ;;  %1419 = vmatprep.subr.bf16.mxu1 %v1521_v16 }
  0x79   : > { %1315 = vmatpush3.bf16.msra.mxu0 %v1522_v17  ;;  %1427 = vmatpush3.bf16.msra.mxu1 %v1522_v17 }
  0x7c   : > { %620 = vmatmul.mubr.bf16.vlgmr.msra.gmra.mrb[0].mxu0 %v1523_v18  ;;  %684 = vmatmul.mubr.bf16.vlgmr.msra.gmra.mrb[0].mxu1 %v1526_v19 }
  0x7d   : > { %627 = vmatprep.mubr.bf16.mxu0 %v1529_v20  ;;  %691 = vmatprep.mubr.bf16.mxu1 %v1531_v21 }
  0x84   : > { %628 = vmatmul.mubr.bf16.gmra.mrb[4].mxu0 %v1533_v22  ;;  %692 = vmatmul.mubr.bf16.gmra.mrb[4].mxu1 %v1534_v23 }
  0x85   : > { %635 = vmatprep.mubr.bf16.mxu0 %v1535_v24  ;;  %699 = vmatprep.mubr.bf16.mxu1 %v1537_v25 }
  0x8c   : > { %636 = vmatmul.mubr.bf16.gmra.mrb[8].mxu0 %v1539_v26  ;;  %700 = vmatmul.mubr.bf16.gmra.mrb[8].mxu1 %v1540_v27 }
  0x8d   : > { %643 = vmatprep.mubr.bf16.mxu0 %v1541_v28  ;;  %707 = vmatprep.mubr.bf16.mxu1 %v1543_v29 }
  0x94   : > { %644 = vmatmul.mubr.bf16.gmra.mrb[12].mxu0 %v1545_v30  ;;  %708 = vmatmul.mubr.bf16.gmra.mrb[12].mxu1 %v1546_v31 }
  0x95   : > { %651 = vmatprep.mubr.bf16.mxu0 %v1547_v32  ;;  %715 = vmatprep.mubr.bf16.mxu1 %v1549_v33 }
  0x9c   : > { %652 = vmatmul.mubr.bf16.gmra.mrb[16].mxu0 %v1551_v34  ;;  %716 = vmatmul.mubr.bf16.gmra.mrb[16].mxu1 %v1552_v35 }
  0x9d   : > { %659 = vmatprep.mubr.bf16.mxu0 %v1553_v36  ;;  %723 = vmatprep.mubr.bf16.mxu1 %v1555_v37 }
  0xa4   : > { %660 = vmatmul.mubr.bf16.gmra.mrb[20].mxu0 %v1557_v38  ;;  %724 = vmatmul.mubr.bf16.gmra.mrb[20].mxu1 %v1558_v39 }
  0xa5   : > { %667 = vmatprep.mubr.bf16.mxu0 %v1559_v40  ;;  %731 = vmatprep.mubr.bf16.mxu1 %v1561_v41 }
  0xac   : > { %668 = vmatmul.mubr.bf16.gmra.mrb[24].mxu0 %v1563_v42  ;;  %732 = vmatmul.mubr.bf16.gmra.mrb[24].mxu1 %v1564_v43 }
  0xad   : > { %675 = vmatprep.mubr.bf16.mxu0 %v1565_v44  ;;  %739 = vmatprep.mubr.bf16.mxu1 %v1567_v45 }
  0xb4   : > { %676 = vmatmul.mubr.bf16.gmra.mrb[28].mxu0 %v1569_v46  ;;  %740 = vmatmul.mubr.bf16.gmra.mrb[28].mxu1 %v1570_v47 }
 0x14f   : > { %v1316_v48 = vpop.f32.mrb[0].mxu0  ;;  %v1364_v49 = vpop.f32.mrb[0].mxu1 }
 0x150   : > { %v1317_v51 = vpop.f32.mrb[1].mxu0  ;;  %v1365_v52 = vpop.f32.mrb[1].mxu1 }
 0x151   : > { %v1318_v53 = vadd.f32 %v1317_v51, %v1316_v48  ;;  %v1366_v54 = vadd.f32 %v1365_v52, %v1364_v49  ;;  %v1319_v55 = vpop.f32.mrb[2].mxu0  ;;  %v1367_v56 = vpop.f32.mrb[2].mxu1 }
 0x152   : > { %v1320_v57 = vpop.f32.mrb[3].mxu0  ;;  %v1368_v58 = vpop.f32.mrb[3].mxu1 }
 0x153   : > { %v622_v59 = vadd.f32 %v1318_v53, %v1947_v50  ;;  %v686_v60 = vadd.f32 %v1366_v54, %v1947_v50  ;;  %v1321_v61 = vadd.f32 %v1320_v57, %v1319_v55  ;;  %v1369_v62 = vadd.f32 %v1368_v58, %v1367_v56 }
 0x155   : > { %v625_v63 = vadd.f32 %v1321_v61, %v1947_v50  ;;  %v689_v0 = vadd.f32 %v1369_v62, %v1947_v50  ;;  %v748_v1 = vmax.f32 %v622_v59, 0.0  ;;  %v764_v2 = vmax.f32 %v686_v60, 0.0 }
 0x157   : > { %v749_v3 = vmax.f32 %v625_v63, 0.0  ;;  %v765_v4 = vmax.f32 %v689_v0, 0.0  ;;  %v1322_v5 = vpop.f32.mrb[4].mxu0  ;;  %v1370_v6 = vpop.f32.mrb[4].mxu1 }
 0x158   : > { %v1323_v7 = vpop.f32.mrb[5].mxu0  ;;  %v1371_v8 = vpop.f32.mrb[5].mxu1 }
 0x159   : > { %v1208_v9 = vpack.c.bf16 %v749_v3, %v748_v1  ;;  %v1248_v10 = vpack.c.bf16 %v765_v4, %v764_v2  ;;  %v1324_v11 = vadd.f32 %v1323_v7, %v1322_v5  ;;  %v1372_v12 = vadd.f32 %v1371_v8, %v1370_v6  ;;  %v1325_v13 = vpop.f32.mrb[6].mxu0  ;;  %v1373_v14 = vpop.f32.mrb[6].mxu1 }
 0x15a   : > { %v1326_v15 = vpop.f32.mrb[7].mxu0  ;;  %v1374_v16 = vpop.f32.mrb[7].mxu1 }
 0x15b   : > { %1209 = vst [vmem:[%s1954_s9] sm:$0xff] %v1208_v9   ;;  %1292 = vst [vmem:[%s1954_s9 + $0x40] sm:$0xff] %v1248_v10   ;;  %v630_v17 = vadd.f32 %v1324_v11, %v1947_v50  ;;  %v694_v18 = vadd.f32 %v1372_v12, %v1947_v50  ;;  %v1327_v19 = vadd.f32 %v1326_v15, %v1325_v13 }
 0x15c   : > { %v1375_v20 = vadd.f32 %v1374_v16, %v1373_v14 }
 0x15d   : > { %v633_v21 = vadd.f32 %v1327_v19, %v1947_v50  ;;  %v750_v23 = vmax.f32 %v630_v17, 0.0  ;;  %v766_v24 = vmax.f32 %v694_v18, 0.0 }
 0x15e   : > { %v697_v22 = vadd.f32 %v1375_v20, %v1947_v50 }
 0x15f   : > { %v751_v25 = vmax.f32 %v633_v21, 0.0  ;;  %v1328_v27 = vpop.f32.mrb[8].mxu0  ;;  %v1376_v28 = vpop.f32.mrb[8].mxu1 }
 0x160   : > { %v767_v26 = vmax.f32 %v697_v22, 0.0  ;;  %v1329_v29 = vpop.f32.mrb[9].mxu0  ;;  %v1377_v30 = vpop.f32.mrb[9].mxu1 }
 0x161   : > { %v1213_v31 = vpack.c.bf16 %v751_v25, %v750_v23  ;;  %v1330_v33 = vadd.f32 %v1329_v29, %v1328_v27  ;;  %v1378_v34 = vadd.f32 %v1377_v30, %v1376_v28  ;;  %v1331_v35 = vpop.f32.mrb[10].mxu0  ;;  %v1379_v36 = vpop.f32.mrb[10].mxu1 }
 0x162   : > { %v1253_v32 = vpack.c.bf16 %v767_v26, %v766_v24  ;;  %v1332_v37 = vpop.f32.mrb[11].mxu0  ;;  %v1380_v38 = vpop.f32.mrb[11].mxu1 }
 0x163   : > { %1285 = vst [vmem:[%s1954_s9 + $0x8] sm:$0xff] %v1213_v31   ;;  %v638_v39 = vadd.f32 %v1330_v33, %v1947_v50  ;;  %v702_v40 = vadd.f32 %v1378_v34, %v1947_v50  ;;  %v1333_v41 = vadd.f32 %v1332_v37, %v1331_v35  ;;  %v1381_v42 = vadd.f32 %v1380_v38, %v1379_v36 }
 0x164   : > { %1293 = vst [vmem:[%s1954_s9 + $0x48] sm:$0xff] %v1253_v32  }
 0x165   : > { %v641_v43 = vadd.f32 %v1333_v41, %v1947_v50  ;;  %v705_v44 = vadd.f32 %v1381_v42, %v1947_v50  ;;  %v752_v45 = vmax.f32 %v638_v39, 0.0  ;;  %v768_v46 = vmax.f32 %v702_v40, 0.0 }
 0x167   : > { %v753_v47 = vmax.f32 %v641_v43, 0.0  ;;  %v769_v48 = vmax.f32 %v705_v44, 0.0  ;;  %v1334_v49 = vpop.f32.mrb[12].mxu0  ;;  %v1382_v51 = vpop.f32.mrb[12].mxu1 }
 0x168   : > { %v1335_v52 = vpop.f32.mrb[13].mxu0  ;;  %v1383_v53 = vpop.f32.mrb[13].mxu1 }
 0x169   : > { %v1218_v54 = vpack.c.bf16 %v753_v47, %v752_v45  ;;  %v1258_v55 = vpack.c.bf16 %v769_v48, %v768_v46  ;;  %v1336_v56 = vadd.f32 %v1335_v52, %v1334_v49  ;;  %v1384_v57 = vadd.f32 %v1383_v53, %v1382_v51  ;;  %v1337_v58 = vpop.f32.mrb[14].mxu0  ;;  %v1385_v59 = vpop.f32.mrb[14].mxu1 }
 0x16a   : > { %v1338_v60 = vpop.f32.mrb[15].mxu0  ;;  %v1386_v61 = vpop.f32.mrb[15].mxu1 }
 0x16b   : > { %1286 = vst [vmem:[%s1954_s9 + $0x10] sm:$0xff] %v1218_v54   ;;  %1294 = vst [vmem:[%s1954_s9 + $0x50] sm:$0xff] %v1258_v55   ;;  %v646_v62 = vadd.f32 %v1336_v56, %v1947_v50  ;;  %v710_v63 = vadd.f32 %v1384_v57, %v1947_v50  ;;  %v1339_v0 = vadd.f32 %v1338_v60, %v1337_v58 }
 0x16c   : > { %v1387_v1 = vadd.f32 %v1386_v61, %v1385_v59 }
 0x16d   : > { %v649_v2 = vadd.f32 %v1339_v0, %v1947_v50  ;;  %v754_v4 = vmax.f32 %v646_v62, 0.0  ;;  %v770_v5 = vmax.f32 %v710_v63, 0.0 }
 0x16e   : > { %v713_v3 = vadd.f32 %v1387_v1, %v1947_v50 }
 0x16f   : > { %v755_v6 = vmax.f32 %v649_v2, 0.0  ;;  %v1340_v8 = vpop.f32.mrb[16].mxu0  ;;  %v1388_v9 = vpop.f32.mrb[16].mxu1 }
 0x170   : > { %v771_v7 = vmax.f32 %v713_v3, 0.0  ;;  %v1341_v10 = vpop.f32.mrb[17].mxu0  ;;  %v1389_v11 = vpop.f32.mrb[17].mxu1 }
 0x171   : > { %v1223_v12 = vpack.c.bf16 %v755_v6, %v754_v4  ;;  %v1342_v14 = vadd.f32 %v1341_v10, %v1340_v8  ;;  %v1390_v15 = vadd.f32 %v1389_v11, %v1388_v9  ;;  %v1343_v16 = vpop.f32.mrb[18].mxu0  ;;  %v1391_v17 = vpop.f32.mrb[18].mxu1 }
 0x172   : > { %v1263_v13 = vpack.c.bf16 %v771_v7, %v770_v5  ;;  %v1344_v18 = vpop.f32.mrb[19].mxu0  ;;  %v1392_v19 = vpop.f32.mrb[19].mxu1 }
 0x173   : > { %1287 = vst [vmem:[%s1954_s9 + $0x18] sm:$0xff] %v1223_v12   ;;  %v654_v20 = vadd.f32 %v1342_v14, %v1947_v50  ;;  %v718_v21 = vadd.f32 %v1390_v15, %v1947_v50  ;;  %v1345_v22 = vadd.f32 %v1344_v18, %v1343_v16  ;;  %v1393_v23 = vadd.f32 %v1392_v19, %v1391_v17 }
 0x174   : > { %1295 = vst [vmem:[%s1954_s9 + $0x58] sm:$0xff] %v1263_v13  }
 0x175   : > { %v657_v24 = vadd.f32 %v1345_v22, %v1947_v50  ;;  %v721_v25 = vadd.f32 %v1393_v23, %v1947_v50  ;;  %v756_v26 = vmax.f32 %v654_v20, 0.0  ;;  %v772_v27 = vmax.f32 %v718_v21, 0.0 }
 0x177   : > { %v757_v28 = vmax.f32 %v657_v24, 0.0  ;;  %v773_v29 = vmax.f32 %v721_v25, 0.0  ;;  %v1346_v30 = vpop.f32.mrb[20].mxu0  ;;  %v1394_v31 = vpop.f32.mrb[20].mxu1 }
 0x178   : > { %v1347_v32 = vpop.f32.mrb[21].mxu0  ;;  %v1395_v33 = vpop.f32.mrb[21].mxu1 }
 0x179   : > { %v1228_v34 = vpack.c.bf16 %v757_v28, %v756_v26  ;;  %v1268_v35 = vpack.c.bf16 %v773_v29, %v772_v27  ;;  %v1348_v36 = vadd.f32 %v1347_v32, %v1346_v30  ;;  %v1396_v37 = vadd.f32 %v1395_v33, %v1394_v31  ;;  %v1349_v38 = vpop.f32.mrb[22].mxu0  ;;  %v1397_v39 = vpop.f32.mrb[22].mxu1 }
 0x17a   : > { %v1350_v40 = vpop.f32.mrb[23].mxu0  ;;  %v1398_v41 = vpop.f32.mrb[23].mxu1 }
 0x17b   : > { %1288 = vst [vmem:[%s1954_s9 + $0x20] sm:$0xff] %v1228_v34   ;;  %1296 = vst [vmem:[%s1954_s9 + $0x60] sm:$0xff] %v1268_v35   ;;  %v662_v42 = vadd.f32 %v1348_v36, %v1947_v50  ;;  %v726_v43 = vadd.f32 %v1396_v37, %v1947_v50  ;;  %v1351_v44 = vadd.f32 %v1350_v40, %v1349_v38 }
 0x17c   : > { %v1399_v45 = vadd.f32 %v1398_v41, %v1397_v39 }
 0x17d   : > { %v665_v46 = vadd.f32 %v1351_v44, %v1947_v50  ;;  %v758_v48 = vmax.f32 %v662_v42, 0.0  ;;  %v774_v49 = vmax.f32 %v726_v43, 0.0 }
 0x17e   : > { %v729_v47 = vadd.f32 %v1399_v45, %v1947_v50 }
 0x17f   : > { %v759_v51 = vmax.f32 %v665_v46, 0.0  ;;  %v1352_v53 = vpop.f32.mrb[24].mxu0  ;;  %v1400_v54 = vpop.f32.mrb[24].mxu1 }
 0x180   : > { %v775_v52 = vmax.f32 %v729_v47, 0.0  ;;  %v1353_v55 = vpop.f32.mrb[25].mxu0  ;;  %v1401_v56 = vpop.f32.mrb[25].mxu1 }
 0x181   : > { %v1233_v57 = vpack.c.bf16 %v759_v51, %v758_v48  ;;  %v1354_v59 = vadd.f32 %v1353_v55, %v1352_v53  ;;  %v1402_v60 = vadd.f32 %v1401_v56, %v1400_v54  ;;  %v1355_v61 = vpop.f32.mrb[26].mxu0  ;;  %v1403_v62 = vpop.f32.mrb[26].mxu1 }
 0x182   : > { %v1273_v58 = vpack.c.bf16 %v775_v52, %v774_v49  ;;  %v1356_v63 = vpop.f32.mrb[27].mxu0  ;;  %v1404_v0 = vpop.f32.mrb[27].mxu1 }
 0x183   : > { %1289 = vst [vmem:[%s1954_s9 + $0x28] sm:$0xff] %v1233_v57   ;;  %v670_v1 = vadd.f32 %v1354_v59, %v1947_v50  ;;  %v734_v2 = vadd.f32 %v1402_v60, %v1947_v50  ;;  %v1357_v3 = vadd.f32 %v1356_v63, %v1355_v61  ;;  %v1405_v4 = vadd.f32 %v1404_v0, %v1403_v62 }
 0x184   : > { %1297 = vst [vmem:[%s1954_s9 + $0x68] sm:$0xff] %v1273_v58  }
 0x185   : > { %v673_v5 = vadd.f32 %v1357_v3, %v1947_v50  ;;  %v737_v6 = vadd.f32 %v1405_v4, %v1947_v50  ;;  %v760_v7 = vmax.f32 %v670_v1, 0.0  ;;  %v776_v8 = vmax.f32 %v734_v2, 0.0 }
 0x187   : > { %v761_v9 = vmax.f32 %v673_v5, 0.0  ;;  %v777_v10 = vmax.f32 %v737_v6, 0.0  ;;  %v1358_v11 = vpop.f32.mrb[28].mxu0  ;;  %v1406_v12 = vpop.f32.mrb[28].mxu1 }
 0x188   : > { %v1359_v13 = vpop.f32.mrb[29].mxu0  ;;  %v1407_v14 = vpop.f32.mrb[29].mxu1 }
 0x189   : > { %v1238_v15 = vpack.c.bf16 %v761_v9, %v760_v7  ;;  %v1278_v16 = vpack.c.bf16 %v777_v10, %v776_v8  ;;  %v1360_v17 = vadd.f32 %v1359_v13, %v1358_v11  ;;  %v1408_v18 = vadd.f32 %v1407_v14, %v1406_v12  ;;  %v1361_v19 = vpop.f32.mrb[30].mxu0  ;;  %v1409_v20 = vpop.f32.mrb[30].mxu1 }
 0x18a   : > { %v1362_v21 = vpop.f32.mrb[31].mxu0  ;;  %v1410_v22 = vpop.f32.mrb[31].mxu1 }
 0x18b   : > { %1290 = vst [vmem:[%s1954_s9 + $0x30] sm:$0xff] %v1238_v15   ;;  %1298 = vst [vmem:[%s1954_s9 + $0x70] sm:$0xff] %v1278_v16   ;;  %v678_v23 = vadd.f32 %v1360_v17, %v1947_v50  ;;  %v742_v24 = vadd.f32 %v1408_v18, %v1947_v50  ;;  %v1363_v25 = vadd.f32 %v1362_v21, %v1361_v19 }
 0x18c   : > { %v1411_v26 = vadd.f32 %v1410_v22, %v1409_v20 }
 0x18d   : > { %v681_v27 = vadd.f32 %v1363_v25, %v1947_v50  ;;  %v762_v29 = vmax.f32 %v678_v23, 0.0  ;;  %v778_v30 = vmax.f32 %v742_v24, 0.0 }
 0x18e   : > { %v745_v28 = vadd.f32 %v1411_v26, %v1947_v50 }
 0x18f   : > { %v763_v31 = vmax.f32 %v681_v27, 0.0 }
 0x190   : > { %v779_v32 = vmax.f32 %v745_v28, 0.0 }
 0x191   : > { %v1243_v33 = vpack.c.bf16 %v763_v31, %v762_v29 }
 0x192   : > { %v1283_v34 = vpack.c.bf16 %v779_v32, %v778_v30 }
 0x193   : > { %1291 = vst [vmem:[%s1954_s9 + $0x38] sm:$0xff] %v1243_v33  }
 0x194   : > { %1299 = vst [vmem:[%s1954_s9 + $0x78] sm:$0xff] %v1283_v34  }
 0x195   : > { %1642 = shalt.err (!%p1639_p5)
}
 0x196   : > { %s1643_s29 = scalar_lea.hbm %s2003_s7, 2048  ;;  %s1647_s20 = scalar_lea.hbm %s2059_s3, 4096 }
 0x197   : > { %p1644_p9 = scmp.ne.s32.totalorder %s2003_s7, %s1643_s29  ;;  %p1648_p3 = scmp.lt.u32.totalorder %s2003_s7, %s2059_s3 }
 0x198   : > { %p1649_p7 = scmp.lt.u32.totalorder %s1647_s20, %s1643_s29  ;;  %p1651_p4 = scmp.lt.u32.totalorder %s1643_s29, %s2003_s7 }
 0x199   : > { %p1645_p1 = pnand %p1644_p9, %p1842_p10 }
 0x19a   : > { %p1650_p13 = por %p1649_p7, %p1648_p3 }
 0x19b   : > { %p1646_p2 = pneg %p1645_p1 }
 0x19c   : > { %p1652_p6 = por %p1651_p4, %p1650_p13 }
 0x19e   : > { %p1653_p8 = pnand %p1652_p6, %p1646_p2 }
 0x1a0   : > { %1656 = shalt.err (!%p1653_p8)
}
 0x1a1   : > { %s1724_s9 = smov 64   ;;  %s1725_s10 = smov 4  }
 0x1a2   : > { %1434 = dma.vmem_to_hbm [thread:$0]  (%p1842_p10), %s2005_s11, 2048, %s2003_s7, %s941_s15, %s1724_s9, %s1724_s9, %s1725_s10  }
 0x1a3 PF: > { %s970_s18 = sand.u32 1, %s1695_s12   ;;  %p2077_p12 = scmp.ne.s32.totalorder %s2067_s23, 0 }
 0x1a4   : > { %p2078_p11 = scmp.ge.s32.totalorder %s1715_s17, 2  ;;  %s971_s26 = scalar_lea.sflag [#allocation4], %s970_s18 }
 0x1a6   : > { %p1445_p0 = pnand %p2078_p11, %p2077_p12 }
 0x1a8   : > { %1690 = dma.done.wait (!%p1445_p0), %s971_s26, 2048  }
 0x1a9   : > { %1692 = vsyncadd (!%p1445_p0), %s971_s26, 4294965248  ;;  %s20_s17 = sadd.s32 1, %s1715_s17   ;;  %s2079_s12 = smov %s1699_s13 }
 0x1aa   : > { %p17_p5 = scmp.ge.s32.totalorder %s20_s17, 4   ;;  %s2080_s13 = smov %s1703_s14 }
 0x1ab   : > { %s2081_s14 = smov %s1851_s5  ;;  %s2082_s15 = smov %s1711_s16 }
 0x1ac   : > { %s2083_s16 = smov %s2085_s28  ;;  %19 = sbr.rel (!%p17_p5) target bundleno = 7 (0x7), region = 85 }
 0x1b3   :  { %976 = vsyncpa [#allocation3], 1 }
 0x1b4   :  { %978 = vsyncpa [#allocation3 + $0x1], 1 }
 0x1b5   :  { %979 = vsyncpa [#allocation6], 1 }
 0x1b6   :  { %980 = vsyncpa [#allocation4], 1 }
 0x1b7   :  { %982 = vsyncpa [#allocation4 + $0x1], 1 }

</bundles_post_ra>
